<compile_context>
chip_gen: v7x
topology: tpu7x:2x2x1
jax: 0.10.0
libtpu: 0.0.40
codegen_flags: <defaults>
</compile_context>

<pallas_src>
import functools

import jax
import jax.numpy as jnp
from jax.experimental import pallas as pl
from jax.experimental.pallas import tpu as pltpu


# -----------------------------------------------------------------------------
# Kernel: one batch tile of TB columns, batch on the lane axis everywhere.
#   lin_ref    : (1, TB)   f32  first-order term + all scalar biases
#   eflatT_ref : (F*D, TB) bf16 flattened embeddings, feature-major
#   w1_ref     : (d1, F*D) bf16 (BN-folded, transposed)
#   b1_ref     : (d1, 1)   f32
#   w2_ref     : (d2, d1)  f32  (BN-folded, transposed; f32 -> no repack pass)
#   b2_ref     : (d2, 1)   f32
#   w3_ref     : (d2, 1)   f32  final linear column
#   o_ref      : (1, TB)   f32
# -----------------------------------------------------------------------------
def deepfm_kernel(lin_ref, eflatT_ref, w1_ref, b1_ref, w2_ref, b2_ref, w3_ref,
                  o_ref, *, num_fields, embed_dim):
    D = embed_dim

    # ---- FactorizationMachine (reduce_sum=True).  Per-field ref slices, each
    # (D, TB) slice cast to f32 only as it is consumed -> live vregs ~ 2*D*TB.
    ef = eflatT_ref[0:D, :].astype(jnp.float32)
    s, sq = ef, ef * ef
    for f in range(1, num_fields):                # F is tiny & static -> unrolled
        ef = eflatT_ref[f * D:(f + 1) * D, :].astype(jnp.float32)
        s = s + ef
        sq = sq + ef * ef
    fm = 0.5 * jnp.sum(s * s - sq, axis=0, keepdims=True)            # (1, TB)

    # ---- MLP (BN folded into W/b; eval-mode dropout = identity).
    # The MXU streams the bf16 (K, TB) tile straight from VMEM; it is NOT kept
    # live in vregs across the FM loop above.
    h = jnp.dot(w1_ref[...], eflatT_ref[...],
                preferred_element_type=jnp.float32)                   # (d1, TB)
    h = jnp.maximum(h + b1_ref[...], 0.0)
    h = jnp.dot(w2_ref[...], h, preferred_element_type=jnp.float32)   # (d2, TB)
    h = jnp.maximum(h + b2_ref[...], 0.0)
    # Final (d2 -> 1) layer: VPU multiply + sublane reduce (not an MXU N=1 dot)
    mlp = jnp.sum(w3_ref[...] * h, axis=0, keepdims=True)             # (1, TB)

    # ---- combine + sigmoid (lane-dense store)
    o_ref[...] = jax.nn.sigmoid(lin_ref[...] + fm + mlp)


# -----------------------------------------------------------------------------
# One-time parameter preparation (BN folding, table fusion, transposes, casts).
# -----------------------------------------------------------------------------
def prepare_params(params):
    def fold_bn(W, b, gamma, beta, mean, var, eps=1e-5):
        scale = gamma / jnp.sqrt(var + eps)
        return W * scale[None, :], (b - mean) * scale + beta

    w1, b1 = fold_bn(params["w1"], params["b1"], params["g1"], params["be1"],
                     params["m1"], params["v1"])
    w2, b2 = fold_bn(params["w2"], params["b2"], params["g2"], params["be2"],
                     params["m2"], params["v2"])
    # Fuse the FeaturesLinear table into the embedding table: column D of the
    # combined bf16 table is the first-order weight -> ONE gather per forward.
    comb = jnp.concatenate([params["emb_table"], params["lin_table"]], axis=1)
    return {
        "offsets": params["offsets"],
        "comb_table": comb.astype(jnp.bfloat16),                # (vocab, D+1)
        # the two true scalars (FeaturesLinear bias + final MLP bias) are
        # folded into the first-order term computed in the wrapper
        "bias_total": (params["lin_bias"][0] + params["b3"][0]).astype(jnp.float32),
        "w1T": w1.T.astype(jnp.bfloat16),                       # (d1, F*D) bf16
        "b1c": b1.reshape(-1, 1).astype(jnp.float32),           # (d1, 1)
        "w2T": w2.T.astype(jnp.float32),                        # (d2, d1)  f32
        "b2c": b2.reshape(-1, 1).astype(jnp.float32),           # (d2, 1)
        "w3c": params["w3"].reshape(-1, 1).astype(jnp.float32), # (d2, 1)
    }


def _pick_tb(batch, tb_max=1024):
    """Largest lane tile (multiple of 128, <= tb_max) that still leaves >= 2
    grid blocks, so v7x can shard the grid across both TensorCores."""
    half = pl.cdiv(batch, 2)
    tb = pl.cdiv(half, 128) * 128
    return max(128, min(tb, tb_max))


# -----------------------------------------------------------------------------
# Forward wrapper: single fused gather + lane-dense layout plumbing + kernel,
# all under one jit so XLA fuses gather / slice / transpose / convert.
# -----------------------------------------------------------------------------
@functools.partial(jax.jit, static_argnames=("tb",))
def deepfm_forward(x_idx, prep, *, tb=None):
    """x_idx: int32 (B, F) per-field categorical indices."""
    B, F = x_idx.shape
    D = prep["comb_table"].shape[1] - 1
    K = F * D
    d1, d2 = prep["w1T"].shape[0], prep["w2T"].shape[0]

    if tb is None:
        tb = _pick_tb(B)
    n_blocks = pl.cdiv(B, tb)
    Bp = n_blocks * tb

    idx = x_idx + prep["offsets"][None, :]                 # global indices
    if Bp != B:                                            # pad batch to tile
        idx = jnp.pad(idx, ((0, Bp - B), (0, 0)))

    g = prep["comb_table"][idx]                            # (Bp, F, D+1) bf16
    lin = (jnp.sum(g[..., D].astype(jnp.float32), axis=1)
           + prep["bias_total"]).reshape(1, Bp)            # (1, Bp) f32
    eflatT = g[..., :D].transpose(1, 2, 0).reshape(K, Bp)  # (K, Bp) bf16

    kernel = functools.partial(deepfm_kernel, num_fields=F, embed_dim=D)

    out = pl.pallas_call(
        kernel,
        out_shape=jax.ShapeDtypeStruct((1, Bp), jnp.float32),
        grid=(n_blocks,),
        in_specs=[
            pl.BlockSpec((1, tb), lambda i: (0, i)),        # lin
            pl.BlockSpec((K, tb), lambda i: (0, i)),        # eflatT
            pl.BlockSpec((d1, K), lambda i: (0, 0)),        # w1T (resident)
            pl.BlockSpec((d1, 1), lambda i: (0, 0)),        # b1
            pl.BlockSpec((d2, d1), lambda i: (0, 0)),       # w2T (resident)
            pl.BlockSpec((d2, 1), lambda i: (0, 0)),        # b2
            pl.BlockSpec((d2, 1), lambda i: (0, 0)),        # w3
        ],
        out_specs=pl.BlockSpec((1, tb), lambda i: (0, i)),
        compiler_params=pltpu.CompilerParams(
            dimension_semantics=("parallel",)),
    )(lin, eflatT, prep["w1T"], prep["b1c"], prep["w2T"], prep["b2c"],
      prep["w3c"])

    return out[0, :B]                                      # (B,)


# -----------------------------------------------------------------------------
# Pure-JAX f32 reference (same math as the PyTorch module, eval mode).
# -----------------------------------------------------------------------------
def reference_forward(x_idx, params):
    offsets = params["offsets"]
    idx = x_idx + offsets[None, :]
    lin = jnp.sum(params["lin_table"][idx][..., 0], axis=1, keepdims=True) \
        + params["lin_bias"]
    e = params["emb_table"][idx]
    fm = 0.5 * jnp.sum(jnp.sum(e, 1) ** 2 - jnp.sum(e * e, 1), -1, keepdims=True)
    B, F, D = e.shape
    h = e.reshape(B, F * D)

    def bn(x, g, b, m, v, eps=1e-5):
        return (x - m) / jnp.sqrt(v + eps) * g + b

    h = jnp.maximum(bn(h @ params["w1"] + params["b1"], params["g1"],
                       params["be1"], params["m1"], params["v1"]), 0.0)
    h = jnp.maximum(bn(h @ params["w2"] + params["b2"], params["g2"],
                       params["be2"], params["m2"], params["v2"]), 0.0)
    mlp = h @ params["w3"] + params["b3"]
    return jax.nn.sigmoid((lin + fm + mlp)[:, 0])


def make_params(field_dims, embed_dim, mlp_dims, key):
    vocab = int(sum(field_dims))
    F = len(field_dims)
    in_dim = F * embed_dim
    ks = jax.random.split(key, 10)
    offsets = jnp.concatenate([jnp.zeros((1,), jnp.int32),
                               jnp.cumsum(jnp.array(field_dims, jnp.int32))[:-1]])
    d1, d2 = mlp_dims
    return {
        "offsets": offsets,
        "lin_table": 0.1 * jax.random.normal(ks[0], (vocab, 1), jnp.float32),
        "lin_bias": 0.1 * jax.random.normal(ks[1], (1,), jnp.float32),
        "emb_table": 0.1 * jax.random.normal(ks[2], (vocab, embed_dim), jnp.float32),
        "w1": 0.1 * jax.random.normal(ks[3], (in_dim, d1), jnp.float32),
        "b1": 0.05 * jax.random.normal(ks[4], (d1,), jnp.float32),
        "w2": 0.1 * jax.random.normal(ks[5], (d1, d2), jnp.float32),
        "b2": 0.05 * jax.random.normal(ks[6], (d2,), jnp.float32),
        "w3": 0.1 * jax.random.normal(ks[7], (d2, 1), jnp.float32),
        "b3": 0.05 * jax.random.normal(ks[8], (1,), jnp.float32),
        # BatchNorm1d eval-mode params (deterministic, slightly non-trivial)
        "g1": jnp.full((d1,), 1.1, jnp.float32), "be1": jnp.full((d1,), 0.02, jnp.float32),
        "m1": jnp.full((d1,), 0.01, jnp.float32), "v1": jnp.full((d1,), 0.9, jnp.float32),
        "g2": jnp.full((d2,), 0.95, jnp.float32), "be2": jnp.full((d2,), -0.01, jnp.float32),
        "m2": jnp.full((d2,), -0.02, jnp.float32), "v2": jnp.full((d2,), 1.05, jnp.float32),
    }


if __name__ == "__main__":
    field_dims = (10, 20, 30, 40)      # num_fields F = 4
    embed_dim = 16                     # D
    mlp_dims = (32, 16)
    batch = 400                        # padded to 512; tb=256 -> 2 parallel blocks

    key = jax.random.PRNGKey(0)
    kp, kx = jax.random.split(key)
    params = make_params(field_dims, embed_dim, mlp_dims, kp)
    prep = prepare_params(params)      # BN folding / table fusion / casts ONCE

    # x: Long tensor (batch, num_fields), per-field categorical indices.
    cols = []
    for i, fd in enumerate(field_dims):
        cols.append(jax.random.randint(jax.random.fold_in(kx, i), (batch,), 0, fd,
                                       jnp.int32))
    x = jnp.stack(cols, axis=1)        # (B, F) int32

    out = deepfm_forward(x, prep)      # tb auto-picked (keeps >= 2 grid blocks)
    out = jax.block_until_ready(out)

    ref = reference_forward(x, params)
    assert out.shape == (batch,)
    # bf16 table gather + bf16 MXU operands -> looser tolerance than pure f32
    assert jnp.allclose(out, ref, atol=1e-2, rtol=0), (
        float(jnp.max(jnp.abs(out - ref))))
    print("KERNEL_OK")
</pallas_src>

<mosaic_0001>
module attributes {stable_mosaic.version = 11 : i64} {
  func.func @deepfm_kernel(%arg0: i32, %arg1: memref<1x256xf32, #tpu.memory_space<vmem>>, %arg2: memref<64x256xbf16, #tpu.memory_space<vmem>>, %arg3: memref<32x64xbf16, #tpu.memory_space<vmem>>, %arg4: memref<32x1xf32, #tpu.memory_space<vmem>>, %arg5: memref<16x32xf32, #tpu.memory_space<vmem>>, %arg6: memref<16x1xf32, #tpu.memory_space<vmem>>, %arg7: memref<16x1xf32, #tpu.memory_space<vmem>>, %arg8: memref<1x256xf32, #tpu.memory_space<vmem>>) attributes {dimension_semantics = [#tpu.dimension_semantics<parallel>], iteration_bounds = array<i64: 2>, scalar_prefetch = 0 : i64, scratch_operands = 0 : i64, tpu.core_type = #tpu.core_type<tc>, window_params = [{transform_indices = @transform_0, window_bounds = array<i64: 1, 256>}, {transform_indices = @transform_1, window_bounds = array<i64: 64, 256>}, {pipeline_mode = #tpu.pipeline_mode<synchronous>, transform_indices = @transform_2, window_bounds = array<i64: 32, 64>}, {pipeline_mode = #tpu.pipeline_mode<synchronous>, transform_indices = @transform_3, window_bounds = array<i64: 32, 1>}, {pipeline_mode = #tpu.pipeline_mode<synchronous>, transform_indices = @transform_4, window_bounds = array<i64: 16, 32>}, {pipeline_mode = #tpu.pipeline_mode<synchronous>, transform_indices = @transform_5, window_bounds = array<i64: 16, 1>}, {pipeline_mode = #tpu.pipeline_mode<synchronous>, transform_indices = @transform_6, window_bounds = array<i64: 16, 1>}, {transform_indices = @transform_7, window_bounds = array<i64: 1, 256>}]} {
    %c0 = arith.constant 0 : index
    %c0_0 = arith.constant 0 : index
    %0 = vector.load %arg2[%c0, %c0_0] : memref<64x256xbf16, #tpu.memory_space<vmem>>, vector<16x256xbf16>
    %1 = arith.extf %0 : vector<16x256xbf16> to vector<16x256xf32>
    %2 = arith.mulf %1, %1 : vector<16x256xf32>
    %c16 = arith.constant 16 : index
    %c0_1 = arith.constant 0 : index
    %3 = vector.load %arg2[%c16, %c0_1] : memref<64x256xbf16, #tpu.memory_space<vmem>>, vector<16x256xbf16>
    %4 = arith.extf %3 : vector<16x256xbf16> to vector<16x256xf32>
    %5 = arith.addf %1, %4 : vector<16x256xf32>
    %6 = arith.mulf %4, %4 : vector<16x256xf32>
    %7 = arith.addf %2, %6 : vector<16x256xf32>
    %c32 = arith.constant 32 : index
    %c0_2 = arith.constant 0 : index
    %8 = vector.load %arg2[%c32, %c0_2] : memref<64x256xbf16, #tpu.memory_space<vmem>>, vector<16x256xbf16>
    %9 = arith.extf %8 : vector<16x256xbf16> to vector<16x256xf32>
    %10 = arith.addf %5, %9 : vector<16x256xf32>
    %11 = arith.mulf %9, %9 : vector<16x256xf32>
    %12 = arith.addf %7, %11 : vector<16x256xf32>
    %c48 = arith.constant 48 : index
    %c0_3 = arith.constant 0 : index
    %13 = vector.load %arg2[%c48, %c0_3] : memref<64x256xbf16, #tpu.memory_space<vmem>>, vector<16x256xbf16>
    %14 = arith.extf %13 : vector<16x256xbf16> to vector<16x256xf32>
    %15 = arith.addf %10, %14 : vector<16x256xf32>
    %16 = arith.mulf %14, %14 : vector<16x256xf32>
    %17 = arith.addf %12, %16 : vector<16x256xf32>
    %18 = arith.mulf %15, %15 : vector<16x256xf32>
    %19 = arith.subf %18, %17 : vector<16x256xf32>
    %cst = arith.constant dense<0.000000e+00> : vector<256xf32>
    %20 = vector.multi_reduction <add>, %19, %cst [0] : vector<16x256xf32> to vector<256xf32>
    %21 = vector.shape_cast %20 : vector<256xf32> to vector<1x256xf32>
    %cst_4 = arith.constant 5.000000e-01 : f32
    %22 = vector.broadcast %cst_4 : f32 to vector<1x256xf32>
    %23 = arith.mulf %22, %21 : vector<1x256xf32>
    %c0_5 = arith.constant 0 : index
    %c0_6 = arith.constant 0 : index
    %24 = vector.load %arg3[%c0_5, %c0_6] : memref<32x64xbf16, #tpu.memory_space<vmem>>, vector<32x64xbf16>
    %c0_7 = arith.constant 0 : index
    %c0_8 = arith.constant 0 : index
    %25 = vector.load %arg2[%c0_7, %c0_8] : memref<64x256xbf16, #tpu.memory_space<vmem>>, vector<64x256xbf16>
    %cst_9 = arith.constant dense<0.000000e+00> : vector<32x256xf32>
    %26 = tpu.matmul %24, %25, %cst_9 {dimension_numbers = #tpu.dot_dimension_numbers<[1], [0], [0], [1], [0, 0, 1, 1], [], []>} : vector<32x64xbf16>, vector<64x256xbf16>, vector<32x256xf32> -> vector<32x256xf32>
    %c0_10 = arith.constant 0 : index
    %c0_11 = arith.constant 0 : index
    %27 = vector.load %arg4[%c0_10, %c0_11] : memref<32x1xf32, #tpu.memory_space<vmem>>, vector<32x1xf32>
    %28 = vector.broadcast %27 : vector<32x1xf32> to vector<32x256xf32>
    %29 = arith.addf %26, %28 : vector<32x256xf32>
    %cst_12 = arith.constant 0.000000e+00 : f32
    %30 = vector.broadcast %cst_12 : f32 to vector<32x256xf32>
    %31 = arith.maximumf %29, %30 : vector<32x256xf32>
    %c0_13 = arith.constant 0 : index
    %c0_14 = arith.constant 0 : index
    %32 = vector.load %arg5[%c0_13, %c0_14] : memref<16x32xf32, #tpu.memory_space<vmem>>, vector<16x32xf32>
    %cst_15 = arith.constant dense<0.000000e+00> : vector<16x256xf32>
    %33 = tpu.matmul %32, %31, %cst_15 {dimension_numbers = #tpu.dot_dimension_numbers<[1], [0], [0], [1], [0, 0, 1, 1], [], []>} : vector<16x32xf32>, vector<32x256xf32>, vector<16x256xf32> -> vector<16x256xf32>
    %c0_16 = arith.constant 0 : index
    %c0_17 = arith.constant 0 : index
    %34 = vector.load %arg6[%c0_16, %c0_17] : memref<16x1xf32, #tpu.memory_space<vmem>>, vector<16x1xf32>
    %35 = vector.broadcast %34 : vector<16x1xf32> to vector<16x256xf32>
    %36 = arith.addf %33, %35 : vector<16x256xf32>
    %cst_18 = arith.constant 0.000000e+00 : f32
    %37 = vector.broadcast %cst_18 : f32 to vector<16x256xf32>
    %38 = arith.maximumf %36, %37 : vector<16x256xf32>
    %c0_19 = arith.constant 0 : index
    %c0_20 = arith.constant 0 : index
    %39 = vector.load %arg7[%c0_19, %c0_20] : memref<16x1xf32, #tpu.memory_space<vmem>>, vector<16x1xf32>
    %40 = vector.broadcast %39 : vector<16x1xf32> to vector<16x256xf32>
    %41 = arith.mulf %40, %38 : vector<16x256xf32>
    %cst_21 = arith.constant dense<0.000000e+00> : vector<256xf32>
    %42 = vector.multi_reduction <add>, %41, %cst_21 [0] : vector<16x256xf32> to vector<256xf32>
    %43 = vector.shape_cast %42 : vector<256xf32> to vector<1x256xf32>
    %c0_22 = arith.constant 0 : index
    %c0_23 = arith.constant 0 : index
    %44 = vector.load %arg1[%c0_22, %c0_23] : memref<1x256xf32, #tpu.memory_space<vmem>>, vector<1x256xf32>
    %45 = arith.addf %44, %23 : vector<1x256xf32>
    %46 = arith.addf %45, %43 : vector<1x256xf32>
    %47 = arith.negf %46 : vector<1x256xf32>
    %48 = math.exp %47 : vector<1x256xf32>
    %cst_24 = arith.constant 1.000000e+00 : f32
    %49 = vector.broadcast %cst_24 : f32 to vector<1x256xf32>
    %50 = arith.addf %49, %48 : vector<1x256xf32>
    %51 = arith.divf %49, %50 : vector<1x256xf32>
    %c0_25 = arith.constant 0 : index
    %c0_26 = arith.constant 0 : index
    %52 = vector.load %arg8[%c0_25, %c0_26] : memref<1x256xf32, #tpu.memory_space<vmem>>, vector<1x256xf32>
    tpu.vector_store %arg8[%c0_25, %c0_26], %51 {strides = array<i32>} : memref<1x256xf32, #tpu.memory_space<vmem>>, vector<1x256xf32>,
    return
  }
  func.func @transform_0(%arg0: i32) -> (i32, i32) {
    %c0_i32 = arith.constant 0 : i32
    %c0_i32_0 = arith.constant 0 : i32
    return %c0_i32, %arg0 : i32, i32
  }
  func.func @transform_1(%arg0: i32) -> (i32, i32) {
    %c0_i32 = arith.constant 0 : i32
    %c0_i32_0 = arith.constant 0 : i32
    return %c0_i32, %arg0 : i32, i32
  }
  func.func @transform_2(%arg0: i32) -> (i32, i32) {
    %c0_i32 = arith.constant 0 : i32
    %c0_i32_0 = arith.constant 0 : i32
    %c0_i32_1 = arith.constant 0 : i32
    return %c0_i32, %c0_i32_0 : i32, i32
  }
  func.func @transform_3(%arg0: i32) -> (i32, i32) {
    %c0_i32 = arith.constant 0 : i32
    %c0_i32_0 = arith.constant 0 : i32
    %c0_i32_1 = arith.constant 0 : i32
    return %c0_i32, %c0_i32_0 : i32, i32
  }
  func.func @transform_4(%arg0: i32) -> (i32, i32) {
    %c0_i32 = arith.constant 0 : i32
    %c0_i32_0 = arith.constant 0 : i32
    %c0_i32_1 = arith.constant 0 : i32
    return %c0_i32, %c0_i32_0 : i32, i32
  }
  func.func @transform_5(%arg0: i32) -> (i32, i32) {
    %c0_i32 = arith.constant 0 : i32
    %c0_i32_0 = arith.constant 0 : i32
    %c0_i32_1 = arith.constant 0 : i32
    return %c0_i32, %c0_i32_0 : i32, i32
  }
  func.func @transform_6(%arg0: i32) -> (i32, i32) {
    %c0_i32 = arith.constant 0 : i32
    %c0_i32_0 = arith.constant 0 : i32
    %c0_i32_1 = arith.constant 0 : i32
    return %c0_i32, %c0_i32_0 : i32, i32
  }
  func.func @transform_7(%arg0: i32) -> (i32, i32) {
    %c0_i32 = arith.constant 0 : i32
    %c0_i32_0 = arith.constant 0 : i32
    return %c0_i32, %arg0 : i32, i32
  }
}

</mosaic_0001>

<bundles_post_ra>
// kernel: deepfm_forward.1
= control target key start
LH: loop header
LB: loop body
LE: loop exit
PB: predicated region body
PF: predicated region fallthrough
CT: control target
= control target key end

     0   :  { %12 = vsyncpa [#allocation4], 0  ;;  %s1290_s0 = inlined_call_operand.vmem [shape: f32[1,512], index: 0, kind: input, shape index: {}]   ;;  %s1291_s1 = inlined_call_operand.vmem [shape: bf16[64,512], index: 1, kind: input, shape index: {}]   ;;  %s1292_s2 = inlined_call_operand.vmem [shape: bf16[32,64], index: 2, kind: input, shape index: {}]   ;;  %s1293_s3 = inlined_call_operand.vmem [shape: f32[32,1], index: 3, kind: input, shape index: {}]   ;;  %s1294_s4 = inlined_call_operand.vmem [shape: f32[16,32], index: 4, kind: input, shape index: {}]   ;;  %s1295_s5 = inlined_call_operand.vmem [shape: f32[16,1], index: 5, kind: input, shape index: {}]   ;;  %s1296_s6 = inlined_call_operand.vmem [shape: f32[16,1], index: 6, kind: input, shape index: {}]   ;;  %s1297_s7 = inlined_call_operand.hbm [shape: f32[1,512], index: 7, kind: output, shape index: {}]  }
   0x1   :  { %14 = vsyncpa [#allocation4 + $0x1], 0  ;;  %s1120_s24 = smov 0   ;;  %s1122_s25 = smov 0  }
   0x2   :  { %s1124_s26 = smov 0   ;;  %s1126_s27 = smov 0  }
   0x3 LB: > { %s1141_s28 = sadd.s32 4294967295, %s1073_s27   ;;  %s873_s29 = sadd.s32 4294967294, %s1073_s27   ;;  %s1073_s27 = sphi %s1126_s27, %s1303_s27   ;;  %s1069_s26 = sphi %s1124_s26, %s1302_s26   ;;  %s1065_s25 = sphi %s1122_s25, %s1301_s25   ;;  %s1061_s24 = sphi %s1120_s24, %s1300_s24  }
   0x4   : > { %s1145_s30 = sadd.s32 1, %s1073_s27   ;;  %s53_s8 = sadd.s32 1, %s1069_s26 }
   0x5   : > { %s50_s9 = ssub.s32 %s1073_s27, %s1145_s30  ;;  %p60_p0 = scmp.ne.s32.totalorder %s1069_s26, %s1065_s25 }
   0x6   : > { %p51_p1 = scmp.eq.s32.totalorder %s50_s9, 0  ;;  %p61_p2 = scmp.eq.s32.totalorder %s1073_s27, 0 }
   0x7   : > { %p195_p3 = scmp.eq.s32.totalorder %s1141_s28, 1  ;;  %p200_p4 = scmp.ne.s32.totalorder %s1065_s25, %s1061_s24 }
   0x8   : > { %s1157_s10 = scalar_select %p51_p1, %s1069_s26, %s53_s8  }
   0x9   : > { %p62_p5 = por %p61_p2, %p60_p0  ;;  %p1159_p6 = por %p195_p3, %p60_p0 }
   0xa   : > { %p201_p7 = scmp.eq.s32.totalorder %s873_s29, 1  ;;  %p875_p9 = scmp.ge.s32.totalorder %s1073_s27, 2 }
   0xc   : > { %p1163_p8 = por %p201_p7, %p200_p4  ;;  %232 = sbr.rel (%p875_p9) target bundleno = 27 (0x1b), region = 36 }
  0x13   : > { %243 = sbr.rel (!%p62_p5) target bundleno = 27 (0x1b), region = 44  ;;  %s245_s13 = sand.u32 (%p62_p5), 1, %s1069_s26  }
  0x14   : > { %s903_s14 = sshll.u32 (%p62_p5), %s1073_s27, 3  ;;  %s876_s15 = sshll.u32 (%p62_p5), %s245_s13, 6 }
  0x15   : > { %s250_s18 = scalar_lea.vmem (%p62_p5), %s1291_s1, %s903_s14  ;;  %s247_s19 = scalar_lea.vmem (%p62_p5), [#allocation2], %s876_s15 }
  0x16   : > { %v292_v0 = vld [vmem:[%s250_s18] sm:$0xff] (%p62_p5)  ;;  %v294_v1 = vld [vmem:[%s250_s18 + $0x10] sm:$0xff] (%p62_p5) }
  0x17   : > { %v296_v2 = vld [vmem:[%s250_s18 + $0x20] sm:$0xff] (%p62_p5)  ;;  %293 = vst [vmem:[%s247_s19] sm:$0xff] (%p62_p5), %v292_v0  ;;  %295 = vst [vmem:[%s247_s19 + $0x8] sm:$0xff] (%p62_p5), %v294_v1  ;;  %v298_v3 = vld [vmem:[%s250_s18 + $0x30] sm:$0xff] (%p62_p5) }
  0x18   : > { %297 = vst [vmem:[%s247_s19 + $0x10] sm:$0xff] (%p62_p5), %v296_v2  ;;  %v300_v4 = vld [vmem:[%s250_s18 + $0x40] sm:$0xff] (%p62_p5)  ;;  %v302_v5 = vld [vmem:[%s250_s18 + $0x50] sm:$0xff] (%p62_p5)  ;;  %299 = vst [vmem:[%s247_s19 + $0x18] sm:$0xff] (%p62_p5), %v298_v3 }
  0x19   : > { %301 = vst [vmem:[%s247_s19 + $0x20] sm:$0xff] (%p62_p5), %v300_v4  ;;  %303 = vst [vmem:[%s247_s19 + $0x28] sm:$0xff] (%p62_p5), %v302_v5  ;;  %v304_v6 = vld [vmem:[%s250_s18 + $0x60] sm:$0xff] (%p62_p5)  ;;  %v306_v7 = vld [vmem:[%s250_s18 + $0x70] sm:$0xff] (%p62_p5) }
  0x1a   : > { %305 = vst [vmem:[%s247_s19 + $0x30] sm:$0xff] %v304_v6  ;;  %307 = vst [vmem:[%s247_s19 + $0x38] sm:$0xff] %v306_v7 }
  0x1b PF: > { %p879_p10 = scmp.ge.s32.totalorder %s1073_s27, 1  ;;  %p312_p11 = scmp.lt.s32.totalorder %s1073_s27, 3 }
  0x1d   : > { %p313_p12 = pnand %p879_p10, %p312_p11 }
  0x1e   : > { %s1178_s20 = sand.u32 (!%p313_p12), 1, %s1065_s25   ;;  %v1075_v8 = vmov (!%p313_p12), 0   ;;  %v460_v9 = vld [vmem:[%s1293_s3] sm:$0xff] (!%p313_p12)  ;;  %v462_v10 = vld [vmem:[%s1293_s3 + $0x10] sm:$0xff] (!%p313_p12)  ;;  %v461_v25 = vld [vmem:[%s1293_s3 + $0x8] sm:$0xff] (!%p313_p12)  ;;  %v1049_v4 = vlaneseq (!%p313_p12)  ;;  %vm534_vm0 = vcmask (!%p313_p12), 523264  }
  0x1f   : > { %316 = sbr.rel (%p313_p12) target bundleno = 570 (0x23a), region = 82  ;;  %s880_s21 = sshll.u32 (!%p313_p12), %s1178_s20, 6  ;;  %573 = vmatprep.mubr.bf16.mxu0 (!%p313_p12), %v1075_v8  ;;  %955 = vset.pattern.permute.xlu0 (!%p313_p12), %v1075_v8  ;;  %v463_v28 = vld [vmem:[%s1293_s3 + $0x18] sm:$0xff] (!%p313_p12)  ;;  %v604_v35 = vld [vmem:[%s1295_s5] sm:$0xff] (!%p313_p12)  ;;  %v605_v40 = vld [vmem:[%s1295_s5 + $0x8] sm:$0xff] (!%p313_p12)  ;;  %vm616_vm1 = vcmask (!%p313_p12), 261120  }
  0x20   : > { %956 = vset.pattern.permute.xlu1 (!%p313_p12), %v1075_v8  ;;  %s1190_s9 = scalar_lea.vmem (!%p313_p12), [#allocation2], %s880_s21  ;;  %466 = vperm.xlu0 (!%p313_p12), %955, %v460_v9   ;;  %v704_v45 = vld [vmem:[%s1296_s6] sm:$0xff] (!%p313_p12)  ;;  %v705_v52 = vld [vmem:[%s1296_s6 + $0x8] sm:$0xff] (!%p313_p12)  ;;  %v1076_v1 = vmov (!%p313_p12), 1935823168   ;;  %v1219_v5 = vshrl.u32 (!%p313_p12), %v1049_v4, 7 }
  0x21   : > { %v454_v11 = vld [vmem:[%s1190_s9] sm:$0xff] (!%p313_p12)  ;;  %v455_v12 = vld [vmem:[%s1190_s9 + $0x8] sm:$0xff] (!%p313_p12)  ;;  %v456_v13 = vld [vmem:[%s1190_s9 + $0x10] sm:$0xff] (!%p313_p12)  ;;  %476 = vperm.xlu1 (!%p313_p12), %956, %v462_v10   ;;  %v1047_v2 = vunpack.c.l.s4 (!%p313_p12), %v1076_v1  ;;  %s882_s21 = sshll.u32 (!%p313_p12), %s1141_s28, 1  ;;  %s881_s8 = sshll.u32 (!%p313_p12), %s1178_s20, 1  ;;  %vm781_vm2 = vcmp.lt.s32.totalorder (!%p313_p12), %v1049_v4, 256 }
  0x22   : > { %v886_v14 = vcombine.high (!%p313_p12), %v454_v11, %v455_v12  ;;  %v885_v15 = vcombine.low (!%p313_p12), %v454_v11, %v455_v12  ;;  %v457_v16 = vld [vmem:[%s1190_s9 + $0x18] sm:$0xff] (!%p313_p12)  ;;  %v458_v17 = vld [vmem:[%s1190_s9 + $0x20] sm:$0xff] (!%p313_p12)  ;;  %v459_v18 = vld [vmem:[%s1190_s9 + $0x28] sm:$0xff] (!%p313_p12)  ;;  %v364_v19 = vunpack.c.l.bf16 (!%p313_p12), %v454_v11  ;;  %v365_v20 = vunpack.c.h.bf16 (!%p313_p12), %v454_v11  ;;  %p355_p13 = scmp.lt.s32.totalorder (!%p313_p12), %s882_s21, 3  ;;  %s353_s13 = scalar_lea.vmem (!%p313_p12), [#allocation3], %s881_s8 }
  0x23   : > { %v888_v21 = vcombine.high (!%p313_p12), %v456_v13, %v457_v16  ;;  %v887_v22 = vcombine.low (!%p313_p12), %v456_v13, %v457_v16  ;;  %v890_v23 = vcombine.high (!%p313_p12), %v458_v17, %v459_v18  ;;  %v889_v24 = vcombine.low (!%p313_p12), %v458_v17, %v459_v18  ;;  %v408_v48 = vld [vmem:[%s1190_s9 + $0x30] sm:$0xff] (!%p313_p12)  ;;  %v409_v49 = vld [vmem:[%s1190_s9 + $0x38] sm:$0xff] (!%p313_p12)  ;;  %s904_s9 = sshll.u32 (!%p313_p12), %s1141_s28, 5  ;;  %s799_s14 = sshll.u32 (!%p313_p12), %s353_s13, 4  ;;  %s1248_s14 = int_to_ptr.vmem [resolvable:$true] %s799_s14 }
  0x24   : > { %541 = vmatprep.subr.bf16.mxu0 (!%p313_p12), %v886_v14  ;;  %v366_v26 = vunpack.c.l.bf16 (!%p313_p12), %v455_v12  ;;  %v367_v27 = vunpack.c.h.bf16 (!%p313_p12), %v455_v12  ;;  %v374_v29 = vunpack.c.l.bf16 (!%p313_p12), %v456_v13  ;;  %v375_v30 = vunpack.c.h.bf16 (!%p313_p12), %v456_v13  ;;  %471 = vperm.xlu0 (!%p313_p12), %955, %v461_v25   ;;  %s1246_s17 = scalar_lea.hbm (!%p313_p12), %s1297_s7, %s904_s9  ;;  %s785_s18 = scalar_lea.sflag (!%p313_p12), [#allocation4], %s1178_s20 }
  0x25   : > { %542 = vmatpush1.bf16.msra.mxu0 (!%p313_p12), %v885_v15  ;;  %v376_v31 = vunpack.c.l.bf16 (!%p313_p12), %v457_v16  ;;  %v377_v32 = vunpack.c.h.bf16 (!%p313_p12), %v457_v16  ;;  %v392_v33 = vunpack.c.l.bf16 (!%p313_p12), %v458_v17  ;;  %v393_v34 = vunpack.c.h.bf16 (!%p313_p12), %v458_v17  ;;  %481 = vperm.xlu1 (!%p313_p12), %956, %v463_v28   ;;  %s971_s19 = scalar_lea.vmem (!%p313_p12), %s1248_s14, 32  ;;  %s1079_s28 = smov (!%p313_p12), [#allocation3]  }
  0x26   : > { %543 = vmatprep.subr.bf16.mxu0 %v888_v21  ;;  %v378_v36 = vadd.f32 %v374_v29, %v364_v19  ;;  %v379_v37 = vadd.f32 %v375_v30, %v365_v20  ;;  %v394_v41 = vunpack.c.l.bf16 %v459_v18  ;;  %v395_v42 = vunpack.c.h.bf16 %v459_v18  ;;  %s1305_s21 = smov (!%p355_p13, %s882_s21), 3  ;;  %p972_p0 = scmp.ne.s32.totalorder %s1248_s14, %s971_s19 }
  0x27   : > { %v380_v38 = vadd.f32 %v376_v31, %v366_v26  ;;  %v381_v39 = vadd.f32 %v377_v32, %v367_v27  ;;  %1039 = vmul.bf16.f32.vacc1 %v454_v11, %v454_v11  ;;  %1019 = vmul.bf16.f32.vacc0 %v455_v12, %v455_v12  ;;  %v966_v27 = vld [vmem:[%s1292_s2 + $0x8] sm:$0xff]   ;;  %s357_s29 = scalar_lea.vmem %s1290_s0, %s1305_s21  ;;  %s975_s21 = sshll.u32 %s1079_s28, 4  ;;  %s976_s21 = int_to_ptr.vmem [resolvable:$false] %s975_s21 }
  0x28   : > { %v396_v43 = vadd.f32 %v392_v33, %v378_v36  ;;  %v397_v44 = vadd.f32 %v393_v34, %v379_v37  ;;  %608 = vperm.xlu0 %955, %v604_v35   ;;  %1040 = vmac.bf16.f32.vacc1 %v456_v13, %v456_v13  ;;  %1020 = vmac.bf16.f32.vacc0 %v457_v16, %v457_v16  ;;  %p973_p1 = pnand %p972_p0, %p1159_p6  ;;  %s977_s22 = scalar_lea.vmem %s976_s21, 64 }
  0x29   : > { %544 = vmatpush1.bf16.msra.mxu0 %v887_v22  ;;  %v398_v46 = vadd.f32 %v394_v41, %v380_v38  ;;  %v399_v47 = vadd.f32 %v395_v42, %v381_v39  ;;  %613 = vperm.xlu1 %956, %v605_v40   ;;  %v410_v50 = vunpack.c.l.bf16 %v408_v48  ;;  %v411_v51 = vunpack.c.h.bf16 %v408_v48  ;;  %p978_p3 = scmp.lt.s32.totalorder %s1248_s14, %s976_s21  ;;  %p979_p4 = scmp.lt.s32.totalorder %s977_s22, %s971_s19 }
  0x2a   : > { %545 = vmatprep.subr.bf16.mxu0 %v890_v23  ;;  %1041 = vmac.bf16.f32.vacc1 %v458_v17, %v458_v17  ;;  %v412_v53 = vunpack.c.l.bf16 %v409_v49  ;;  %v413_v54 = vunpack.c.h.bf16 %v409_v49  ;;  %1021 = vmac.bf16.f32.vacc0 %v459_v18, %v459_v18  ;;  %p974_p2 = pneg %p973_p1 }
  0x2b   : > { %v414_v55 = vadd.f32 %v410_v50, %v396_v43  ;;  %v415_v56 = vadd.f32 %v411_v51, %v397_v44  ;;  %1042 = vmac.bf16.f32.vacc1 %v408_v48, %v408_v48  ;;  %v1048_v3 = vunpack.c.0.s8 %v1047_v2  ;;  %p980_p5 = por %p979_p4, %p978_p3 }
  0x2c   : > { %708 = vperm.xlu0 %955, %v704_v45   ;;  %v416_v57 = vadd.f32 %v412_v53, %v398_v46  ;;  %v417_v58 = vadd.f32 %v413_v54, %v399_v47  ;;  %1022 = vmac.bf16.f32.vacc0 %v409_v49, %v409_v49  ;;  %v892_v18 = vcombine.high %v408_v48, %v409_v49 }
  0x2d   : > { %546 = vmatpush1.bf16.msra.mxu0 %v889_v24  ;;  %713 = vperm.xlu1 %956, %v705_v52   ;;  %v426_v59 = vmul.f32 %v414_v55, %v414_v55  ;;  %v427_v60 = vmul.f32 %v415_v56, %v415_v56  ;;  %v1043_v61 = vmovacc.add.low.vacc1  ;;  %v1051_v6 = vsub.s32 %v1048_v3, %v1219_v5  ;;  %v965_v24 = vld [vmem:[%s1292_s2] sm:$0xff]   ;;  %p981_p7 = pnand %p980_p5, %p974_p2 }
  0x2e   : > { %v1044_v62 = vmovacc.add.high.vacc1  ;;  %v428_v10 = vmul.f32 %v416_v57, %v416_v57  ;;  %v429_v11 = vmul.f32 %v417_v58, %v417_v58  ;;  %v1023_v12 = vmovacc.add.low.vacc0  ;;  %547 = vmatprep.subr.bf16.mxu0 %v892_v18 }
  0x2f   : > { %v1024_v13 = vmovacc.add.high.vacc0  ;;  %v891_v19 = vcombine.low %v408_v48, %v409_v49  ;;  %v1077_v28 = vmov 0.0  }
  0x30   : > { %v1045_v63 = vcombine.low %v1043_v61, %v1044_v62  ;;  %v1046_v0 = vcombine.high %v1043_v61, %v1044_v62  ;;  %687 = vmatprep.mubr.f32.mxu1 %v1077_v28  ;;  %v603_v61 = vld [vmem:[%s1294_s4 + $0x8] sm:$0xff] }
  0x31   : > { %v1025_v14 = vcombine.low %v1023_v12, %v1024_v13  ;;  %v1026_v15 = vcombine.high %v1023_v12, %v1024_v13  ;;  %548 = vmatpush1.bf16.msra.mxu0 %v891_v19 }
  0x32   : > { %v1052_v7 = vrot.slane %v1045_v63, %v1051_v6  ;;  %v1058_v9 = vrot.slane %v1046_v0, %v1051_v6 }
  0x33   : > { %v1032_v16 = vrot.slane %v1025_v14, %v1051_v6  ;;  %v1038_v17 = vrot.slane %v1026_v15, %v1051_v6 }
  0x34   : > { %v430_v20 = vsub.f32 %v426_v59, %v1052_v7  ;;  %v431_v21 = vsub.f32 %v427_v60, %v1058_v9  ;;  %893 = vmatmul.mubr.msk.bf16.vlgmr.msra.gmra.mrb[0].mxu0 %vm534_vm0, %v965_v24  ;;  %v602_v60 = vld [vmem:[%s1294_s4] sm:$0xff] }
  0x35   : > { %v432_v22 = vsub.f32 %v428_v10, %v1032_v16  ;;  %v433_v23 = vsub.f32 %v429_v11, %v1038_v17  ;;  %583 = vmatprep.mubr.bf16.mxu0 %v1075_v8 }
  0x37   : > { %v434_v25 = vadd.f32 %v432_v22, %v430_v20  ;;  %v441_v26 = vadd.f32 %v433_v23, %v431_v21 }
  0x39   : > { %v435_v62 = vrot.slane %v434_v25, 4  ;;  %v442_v63 = vrot.slane %v441_v26, 4 }
  0x3b   : > { %v436_v0 = vadd.f32 %v435_v62, %v434_v25  ;;  %v443_v1 = vadd.f32 %v442_v63, %v441_v26 }
  0x3c   : > { %894 = vmatmul.mubr.msk.bf16.gmra.mrb[4].mxu0 %vm534_vm0, %v966_v27 }
  0x3d   : > { %v437_v2 = vrot.slane %v436_v0, 2  ;;  %v444_v3 = vrot.slane %v443_v1, 2 }
  0x3f   : > { %v438_v6 = vadd.f32 %v437_v2, %v436_v0  ;;  %v445_v7 = vadd.f32 %v444_v3, %v443_v1 }
  0x41   : > { %v439_v9 = vrot.slane %v438_v6, 1  ;;  %v446_v10 = vrot.slane %v445_v7, 1 }
  0x43   : > { %v440_v11 = vadd.f32 %v439_v9, %v438_v6  ;;  %v447_v12 = vadd.f32 %v446_v10, %v445_v7 }
  0x45   : > { %v448_v13 = vmul.f32 0.5, %v440_v11  ;;  %v449_v14 = vmul.f32 0.5, %v447_v12 }
  0x47   : > { %v737_v15 = vcombine.low %v448_v13, %v449_v14 }
  0x9f   : > { %v467_v29 = vpop.permute.xlu0 %466 }
  0xa0   : > { %v477_v38 = vpop.permute.xlu1 %476 }
  0xa3   : > { %v472_v33 = vpop.permute.xlu0 %471 }
  0xa4   : > { %v482_v48 = vpop.permute.xlu1 %481 }
  0xa7   : > { %v609_v16 = vpop.permute.xlu0 %608 }
  0xa8   : > { %v614_v20 = vpop.permute.xlu1 %613 }
 0x107   : > { %v575_v30 = vpop.f32.mrb[0].mxu0 }
 0x108   : > { %v576_v31 = vadd.f32 %v575_v30, %v467_v29  ;;  %v577_v32 = vpop.f32.mrb[1].mxu0  ;;  %v714_v30 = vpop.permute.xlu1 %713 }
 0x109   : > { %v578_v34 = vadd.f32 %v577_v32, %v467_v29  ;;  %v579_v35 = vpop.f32.mrb[2].mxu0  ;;  %v709_v29 = vpop.permute.xlu0 %708  ;;  %v1078_v32 = vmov 1966171168  }
 0x10a   : > { %v580_v36 = vadd.f32 %v579_v35, %v472_v33  ;;  %v581_v37 = vpop.f32.mrb[3].mxu0  ;;  %v594_v40 = vmax.f32 %v576_v31, 0.0 }
 0x10b   : > { %v582_v39 = vadd.f32 %v581_v37, %v472_v33  ;;  %v595_v41 = vmax.f32 %v578_v34, 0.0  ;;  %v739_v33 = vunpack.c.l.s4 %v1078_v32 }
 0x10c   : > { %v596_v8 = vmax.f32 %v580_v36, 0.0 }
 0x10d   : > { %v597_v42 = vmax.f32 %v582_v39, 0.0 }
 0x10e   : > { %v907_v43 = vpack.c.bf16 %v596_v8, %v594_v40  ;;  %v740_v40 = vunpack.c.0.s8 %v739_v33 }
 0x10f   : > { %v585_v44 = vpop.f32.mrb[4].mxu0  ;;  %v905_v45 = vpack.c.bf16 %v597_v42, %v595_v41 }
 0x110   : > { %v586_v46 = vadd.f32 %v585_v44, %v477_v38  ;;  %v587_v47 = vpop.f32.mrb[5].mxu0  ;;  %v743_v44 = vsub.s32 %v740_v40, %v1219_v5 }
 0x111   : > { %v588_v49 = vadd.f32 %v587_v47, %v477_v38  ;;  %v589_v50 = vpop.f32.mrb[6].mxu0  ;;  %906 = vmatprep.subr.bf16.mxu1 %v905_v45 }
 0x112   : > { %v590_v51 = vadd.f32 %v589_v50, %v482_v48  ;;  %v591_v52 = vpop.f32.mrb[7].mxu0  ;;  %908 = vmatpush1.bf16.msra.mxu1 %v907_v43  ;;  %v598_v54 = vmax.f32 %v586_v46, 0.0 }
 0x113   : > { %v592_v53 = vadd.f32 %v591_v52, %v482_v48  ;;  %v599_v56 = vmax.f32 %v588_v49, 0.0  ;;  %v744_v49 = vrot.slane %v737_v15, %v743_v44 }
 0x114   : > { %v600_v55 = vmax.f32 %v590_v51, 0.0 }
 0x115   : > { %v601_v57 = vmax.f32 %v592_v53, 0.0 }
 0x116   : > { %v911_v58 = vpack.c.bf16 %v600_v55, %v598_v54  ;;  %v751_v54 = vrot.slane %v744_v49, %v743_v44  ;;  %v734_v55 = vld [vmem:[%s357_s29] sm:$0x3] }
 0x117   : > { %v909_v59 = vpack.c.bf16 %v601_v57, %v599_v56 }
 0x118   : > { %v753_v5 = vadd.f32 %v751_v54, %v734_v55 }
 0x119   : > { %910 = vmatprep.subr.bf16.mxu1 %v909_v59 }
 0x11a   : > { %912 = vmatpush1.bf16.msra.mxu1 %v911_v58 }
 0x11d   : > { %895 = vmatmul.mubr.msk.f32.vlgmr.msra.gmra.mrb[0].mxu1 %vm616_vm1, %v602_v60 }
 0x11e   : > { %693 = vmatprep.mubr.f32.mxu1 %v1077_v28 }
 0x121   : > { %896 = vmatmul.mubr.msk.f32.gmra.mrb[2].mxu1 %vm616_vm1, %v603_v61 }
 0x1f0   : > { %v689_v17 = vpop.f32.mrb[0].mxu1 }
 0x1f1   : > { %v690_v18 = vadd.f32 %v689_v17, %v609_v16  ;;  %v691_v19 = vpop.f32.mrb[1].mxu1 }
 0x1f2   : > { %v692_v21 = vadd.f32 %v691_v19, %v609_v16 }
 0x1f3   : > { %v700_v23 = vmax.f32 %v690_v18, 0.0 }
 0x1f4   : > { %v695_v22 = vpop.f32.mrb[2].mxu1  ;;  %v701_v26 = vmax.f32 %v692_v21, 0.0 }
 0x1f5   : > { %v696_v24 = vadd.f32 %v695_v22, %v614_v20  ;;  %v697_v25 = vpop.f32.mrb[3].mxu1  ;;  %v716_v34 = vmul.f32 %v709_v29, %v700_v23 }
 0x1f6   : > { %v698_v27 = vadd.f32 %v697_v25, %v614_v20  ;;  %v717_v36 = vmul.f32 %v709_v29, %v701_v26 }
 0x1f7   : > { %v702_v28 = vmax.f32 %v696_v24, 0.0 }
 0x1f8   : > { %v703_v31 = vmax.f32 %v698_v27, 0.0 }
 0x1f9   : > { %v718_v35 = vmul.f32 %v714_v30, %v702_v28 }
 0x1fa   : > { %v719_v37 = vmul.f32 %v714_v30, %v703_v31 }
 0x1fb   : > { %v720_v38 = vadd.f32 %v718_v35, %v716_v34 }
 0x1fc   : > { %v727_v39 = vadd.f32 %v719_v37, %v717_v36 }
 0x1fd   : > { %v721_v8 = vrot.slane %v720_v38, 4 }
 0x1fe   : > { %v728_v41 = vrot.slane %v727_v39, 4 }
 0x1ff   : > { %v722_v42 = vadd.f32 %v721_v8, %v720_v38 }
 0x200   : > { %v729_v43 = vadd.f32 %v728_v41, %v727_v39 }
 0x201   : > { %v723_v45 = vrot.slane %v722_v42, 2 }
 0x202   : > { %v730_v46 = vrot.slane %v729_v43, 2 }
 0x203   : > { %v724_v47 = vadd.f32 %v723_v45, %v722_v42 }
 0x204   : > { %v731_v48 = vadd.f32 %v730_v46, %v729_v43 }
 0x205   : > { %v725_v50 = vrot.slane %v724_v47, 1 }
 0x206   : > { %v732_v51 = vrot.slane %v731_v48, 1 }
 0x207   : > { %v726_v52 = vadd.f32 %v725_v50, %v724_v47 }
 0x208   : > { %v733_v53 = vadd.f32 %v732_v51, %v731_v48 }
 0x20a   : > { %v756_v56 = vcombine.low %v726_v52, %v733_v53 }
 0x20c   : > { %v763_v57 = vrot.slane %v756_v56, %v743_v44 }
 0x20e   : > { %v770_v58 = vrot.slane %v763_v57, %v743_v44 }
 0x210   : > { %v772_v59 = vadd.f32 %v770_v58, %v753_v5 }
 0x212   : > { %v897_v60 = vmul.f32 -1.442695, %v772_v59 }
 0x214   : > { %967 = vpow2.f32 %v897_v60 }
 0x21e   : > { %v968_v61 = vpop.eup %967 }
 0x21f   : > { %v776_v62 = vadd.f32 1.0, %v968_v61 }
 0x221   : > { %969 = vrcp.f32 %v776_v62 }
 0x22b   : > { %v970_v63 = vpop.eup %969 }
 0x22c   : > { %783 = vst.msk [vmem:[%s353_s13] sm:$0x3] %vm781_vm2, %v970_v63 }
 0x22d   : > { %984 = shalt.err (!%p981_p7)
}
 0x22e   : > { %s985_s20 = scalar_lea.hbm %s1246_s17, 32  ;;  %s989_s8 = scalar_lea.hbm %s1297_s7, 64 }
 0x22f   : > { %p986_p10 = scmp.ne.s32.totalorder %s1246_s17, %s985_s20  ;;  %p990_p13 = scmp.lt.u32.totalorder %s1246_s17, %s1297_s7 }
 0x230   : > { %p991_p0 = scmp.lt.u32.totalorder %s989_s8, %s985_s20  ;;  %p993_p2 = scmp.lt.u32.totalorder %s985_s20, %s1246_s17 }
 0x231   : > { %p987_p11 = pnand %p986_p10, %p1159_p6 }
 0x232   : > { %p992_p1 = por %p991_p0, %p990_p13 }
 0x233   : > { %p988_p12 = pneg %p987_p11 }
 0x234   : > { %p994_p3 = por %p993_p2, %p992_p1 }
 0x236   : > { %p995_p4 = pnand %p994_p3, %p988_p12 }
 0x238   : > { %998 = shalt.err (!%p995_p4)
}
 0x239   : > { %913 = dma.vmem_to_hbm [thread:$0]  (%p1159_p6), %s1248_s14, 32, %s1246_s17, %s785_s18  }
 0x23a PF: > { %s811_s15 = sand.u32 1, %s1061_s24   ;;  %p916_p5 = pnand %p875_p9, %p1163_p8 }
 0x23b   : > { %s812_s16 = scalar_lea.sflag [#allocation4], %s811_s15 }
 0x23c   : > { %1016 = dma.done.wait (!%p916_p5), %s812_s16, 32  }
 0x23d   : > { %1018 = vsyncadd (!%p916_p5), %s812_s16, 4294967264  ;;  %p17_p7 = scmp.ge.s32.totalorder %s1145_s30, 4   ;;  %s1300_s24 = smov %s1065_s25 }
 0x23e   : > { %s1301_s25 = smov %s1069_s26  ;;  %s1302_s26 = smov %s1157_s10 }
 0x23f   : > { %s1303_s27 = smov %s1145_s30  ;;  %19 = sbr.rel (!%p17_p7) target bundleno = 3 (0x3), region = 129 }
 0x246   :  { %817 = vsyncpa [#allocation4], 1 }
 0x247   :  { %819 = vsyncpa [#allocation4 + $0x1], 1 }

</bundles_post_ra>
